<compile_context>
chip_gen: v7x
topology: tpu7x:2x2x1
jax: 0.10.0
libtpu: 0.0.40
codegen_flags: <defaults>
</compile_context>

<pallas_src>
import functools

import jax
import jax.numpy as jnp
from jax import lax
from jax.experimental import pallas as pl
from jax.experimental.pallas import tpu as pltpu


def _ce2d_kernel(logits_ref, targets_ref, out_ref, *, hw, tile_hw, ignore_index):
    # logits_ref : (1, C, TILE_HW) native-dtype logits tile (pixels on lanes)
    # targets_ref: (1, 1, TILE_HW) int32 class ids
    # out_ref    : (1, 2, 128) f32; row 0 = sum of nll, row 1 = valid-pixel count
    t = pl.program_id(1)

    logits = logits_ref[0].astype(jnp.float32)         # (C, T), cast after DMA
    tgt = targets_ref[0]                               # (1, T) int32

    # numerically stable log-softmax over the channel (sublane) axis
    cmax = jnp.max(logits, axis=0, keepdims=True)      # (1, T)
    shifted = logits - cmax                            # (C, T)
    lse = jnp.log(jnp.sum(jnp.exp(shifted), axis=0, keepdims=True))  # (1, T)

    # shifted logit of the target class via one-hot compare over channels
    # (lse is applied once per pixel; full logp tile is never materialized)
    ch = lax.broadcasted_iota(jnp.int32, shifted.shape, 0)            # (C, T)
    picked = jnp.sum(jnp.where(ch == tgt, shifted, 0.0),
                     axis=0, keepdims=True)                           # (1, T)

    # mask pixels that are padding (>= hw) or carry the ignore label
    pix = t * tile_hw + lax.broadcasted_iota(jnp.int32, (1, tile_hw), 1)
    valid = (pix < hw) & (tgt != ignore_index)

    nll = jnp.where(valid, lse - picked, 0.0)          # -log p(target), masked
    nll_sum = jnp.sum(nll)
    cnt_sum = jnp.sum(jnp.where(valid, 1.0, 0.0))

    rows = lax.broadcasted_iota(jnp.int32, (1, 2, 128), 1)
    out_ref[...] = jnp.where(rows == 0, nll_sum, cnt_sum)


def _choose_tile_hw(hw, c, itemsize, max_block_bytes=2 * 1024 * 1024):
    """Largest 128-aligned pixel tile whose logits block fits the byte budget,
    preferring a tile that divides hw exactly (avoids a padding copy)."""
    budget = max(128, (max_block_bytes // max(1, c * itemsize)) // 128 * 128)
    hw128 = ((hw + 127) // 128) * 128
    if hw128 <= budget:
        return hw128
    for cand in range(budget, 127, -128):
        if hw % cand == 0:
            return cand
    return budget


@functools.partial(jax.jit, static_argnames=("ignore_index",))
def cross_entropy_loss_2d(outputs, targets, ignore_index=-100):
    """Mean NLL of log_softmax(outputs, axis=1) at target pixels.

    outputs: (N, C, H, W) float logits (any float dtype; cast inside kernel).
    targets: (N, H, W) integer class ids.  Pixels equal to `ignore_index`
    are excluded from both the sum and the mean denominator (NLLLoss default).
    """
    n, c, h, w = outputs.shape
    hw = h * w
    itemsize = jnp.dtype(outputs.dtype).itemsize

    tile_hw = _choose_tile_hw(hw, c, itemsize)
    num_tiles = pl.cdiv(hw, tile_hw)
    hw_pad = num_tiles * tile_hw

    logits = outputs.reshape(n, c, hw)                 # free view of NCHW
    tgt = targets.reshape(n, 1, hw).astype(jnp.int32)
    if hw_pad != hw:                                   # only pads awkward H*W
        logits = jnp.pad(logits, ((0, 0), (0, 0), (0, hw_pad - hw)))
        tgt = jnp.pad(tgt, ((0, 0), (0, 0), (0, hw_pad - hw)))

    kernel = functools.partial(_ce2d_kernel, hw=hw, tile_hw=tile_hw,
                               ignore_index=ignore_index)

    partials = pl.pallas_call(
        kernel,
        out_shape=jax.ShapeDtypeStruct((n * num_tiles, 2, 128), jnp.float32),
        grid_spec=pltpu.PrefetchScalarGridSpec(
            num_scalar_prefetch=0,
            grid=(n, num_tiles),
            in_specs=[
                pl.BlockSpec((1, c, tile_hw), lambda i, t: (i, 0, t)),
                pl.BlockSpec((1, 1, tile_hw), lambda i, t: (i, 0, t)),
            ],
            out_specs=pl.BlockSpec(
                (1, 2, 128), lambda i, t: (i * num_tiles + t, 0, 0)),
        ),
        compiler_params=pltpu.CompilerParams(
            dimension_semantics=("parallel", "parallel"),
            vmem_limit_bytes=32 * 1024 * 1024,
        ),
    )(logits, tgt)

    nll_total = jnp.sum(partials[:, 0, 0])
    cnt_total = jnp.sum(partials[:, 1, 0])
    # TODO(synk): optional per-class `weight` of torch.nn.NLLLoss(weight) not
    # implemented; this computes the module's default weight=None path.
    return nll_total / cnt_total


def _reference(outputs, targets):
    logp = jax.nn.log_softmax(outputs.astype(jnp.float32), axis=1)  # (N,C,H,W)
    picked = jnp.take_along_axis(logp, targets[:, None, :, :], axis=1)[:, 0]
    return -jnp.mean(picked)


if __name__ == "__main__":
    key = jax.random.PRNGKey(0)
    k_logits, k_tgt = jax.random.split(key)

    N, C, H, W = 2, 4, 16, 16
    outputs = jax.random.normal(k_logits, (N, C, H, W), dtype=jnp.float32)
    targets = jax.random.randint(k_tgt, (N, H, W), 0, C, dtype=jnp.int32)

    loss = jax.block_until_ready(cross_entropy_loss_2d(outputs, targets))
    ref = jax.block_until_ready(_reference(outputs, targets))
    assert jnp.allclose(loss, ref, atol=1e-5, rtol=1e-5), (loss, ref)

    print("KERNEL_OK")
</pallas_src>

<mosaic_0001>
module attributes {stable_mosaic.version = 11 : i64} {
  func.func @_ce2d_kernel(%arg0: i32, %arg1: i32, %arg2: memref<1x4x256xf32, #tpu.memory_space<vmem>>, %arg3: memref<1x1x256xi32, #tpu.memory_space<vmem>>, %arg4: memref<1x2x128xf32, #tpu.memory_space<vmem>>) attributes {dimension_semantics = [#tpu.dimension_semantics<parallel>, #tpu.dimension_semantics<parallel>], iteration_bounds = array<i64: 2, 1>, scalar_prefetch = 0 : i64, scratch_operands = 0 : i64, tpu.core_type = #tpu.core_type<tc>, window_params = [{transform_indices = @transform_0, window_bounds = array<i64: 1, 4, 256>}, {transform_indices = @transform_1, window_bounds = array<i64: 1, 1, 256>}, {transform_indices = @transform_2, window_bounds = array<i64: 1, 2, 128>}]} {
    %c0 = arith.constant 0 : index
    %c0_0 = arith.constant 0 : index
    %c0_1 = arith.constant 0 : index
    %0 = vector.load %arg2[%c0, %c0_0, %c0_1] : memref<1x4x256xf32, #tpu.memory_space<vmem>>, vector<1x4x256xf32>
    %1 = vector.shape_cast %0 : vector<1x4x256xf32> to vector<4x256xf32>
    %c0_2 = arith.constant 0 : index
    %c0_3 = arith.constant 0 : index
    %c0_4 = arith.constant 0 : index
    %2 = vector.load %arg3[%c0_2, %c0_3, %c0_4] : memref<1x1x256xi32, #tpu.memory_space<vmem>>, vector<1x1x256xi32>
    %3 = vector.shape_cast %2 : vector<1x1x256xi32> to vector<1x256xi32>
    %cst = arith.constant dense<0xFF800000> : vector<256xf32>
    %4 = vector.multi_reduction <maximumf>, %1, %cst [0] : vector<4x256xf32> to vector<256xf32>
    %5 = vector.shape_cast %4 : vector<256xf32> to vector<1x256xf32>
    %6 = vector.broadcast %5 : vector<1x256xf32> to vector<4x256xf32>
    %7 = arith.subf %1, %6 : vector<4x256xf32>
    %8 = math.exp %7 : vector<4x256xf32>
    %cst_5 = arith.constant dense<0.000000e+00> : vector<256xf32>
    %9 = vector.multi_reduction <add>, %8, %cst_5 [0] : vector<4x256xf32> to vector<256xf32>
    %10 = vector.shape_cast %9 : vector<256xf32> to vector<1x256xf32>
    %11 = math.log %10 : vector<1x256xf32>
    %12 = tpu.iota {dimensions = array<i32: 0>} : vector<4x256xi32>
    %13 = vector.broadcast %3 : vector<1x256xi32> to vector<4x256xi32>
    %14 = arith.cmpi eq, %12, %13 : vector<4x256xi32>
    %cst_6 = arith.constant 0.000000e+00 : f32
    %15 = vector.broadcast %cst_6 : f32 to vector<4x256xf32>
    %16 = arith.select %14, %7, %15 : vector<4x256xi1>, vector<4x256xf32>
    %cst_7 = arith.constant dense<0.000000e+00> : vector<256xf32>
    %17 = vector.multi_reduction <add>, %16, %cst_7 [0] : vector<4x256xf32> to vector<256xf32>
    %18 = vector.shape_cast %17 : vector<256xf32> to vector<1x256xf32>
    %c256_i32 = arith.constant 256 : i32
    %19 = arith.muli %arg1, %c256_i32 : i32
    %20 = tpu.iota {dimensions = array<i32: 1>} : vector<1x256xi32>
    %21 = vector.broadcast %19 : i32 to vector<1x256xi32>
    %22 = arith.addi %21, %20 : vector<1x256xi32>
    %c256_i32_8 = arith.constant 256 : i32
    %23 = vector.broadcast %c256_i32_8 : i32 to vector<1x256xi32>
    %24 = arith.cmpi slt, %22, %23 : vector<1x256xi32>
    %c-100_i32 = arith.constant -100 : i32
    %25 = vector.broadcast %c-100_i32 : i32 to vector<1x256xi32>
    %26 = arith.cmpi ne, %3, %25 : vector<1x256xi32>
    %27 = arith.andi %24, %26 : vector<1x256xi1>
    %28 = arith.subf %11, %18 : vector<1x256xf32>
    %cst_9 = arith.constant 0.000000e+00 : f32
    %29 = vector.broadcast %cst_9 : f32 to vector<1x256xf32>
    %30 = arith.select %27, %28, %29 : vector<1x256xi1>, vector<1x256xf32>
    %31 = vector.shape_cast %30 : vector<1x256xf32> to vector<1x1x256xf32>
    %cst_10 = arith.constant dense<0.000000e+00> : vector<1xf32>
    %32 = vector.multi_reduction <add>, %31, %cst_10 [1, 2] : vector<1x1x256xf32> to vector<1xf32>
    %33 = vector.shape_cast %32 : vector<1xf32> to vector<1x1x1xf32>
    %34 = vector.extract %33[0, 0, 0] : f32 from vector<1x1x1xf32>
    %cst_11 = arith.constant 1.000000e+00 : f32
    %cst_12 = arith.constant 0.000000e+00 : f32
    %35 = vector.broadcast %cst_11 : f32 to vector<1x256xf32>
    %36 = vector.broadcast %cst_12 : f32 to vector<1x256xf32>
    %37 = arith.select %27, %35, %36 : vector<1x256xi1>, vector<1x256xf32>
    %38 = vector.shape_cast %37 : vector<1x256xf32> to vector<1x1x256xf32>
    %cst_13 = arith.constant dense<0.000000e+00> : vector<1xf32>
    %39 = vector.multi_reduction <add>, %38, %cst_13 [1, 2] : vector<1x1x256xf32> to vector<1xf32>
    %40 = vector.shape_cast %39 : vector<1xf32> to vector<1x1x1xf32>
    %41 = vector.extract %40[0, 0, 0] : f32 from vector<1x1x1xf32>
    %42 = tpu.iota {dimensions = array<i32: 1>} : vector<1x2x128xi32>
    %c0_i32 = arith.constant 0 : i32
    %43 = vector.broadcast %c0_i32 : i32 to vector<1x2x128xi32>
    %44 = arith.cmpi eq, %42, %43 : vector<1x2x128xi32>
    %45 = vector.broadcast %34 : f32 to vector<1x2x128xf32>
    %46 = vector.broadcast %41 : f32 to vector<1x2x128xf32>
    %47 = arith.select %44, %45, %46 : vector<1x2x128xi1>, vector<1x2x128xf32>
    %c0_14 = arith.constant 0 : index
    %c0_15 = arith.constant 0 : index
    %c0_16 = arith.constant 0 : index
    %48 = vector.load %arg4[%c0_14, %c0_15, %c0_16] : memref<1x2x128xf32, #tpu.memory_space<vmem>>, vector<1x2x128xf32>
    tpu.vector_store %arg4[%c0_14, %c0_15, %c0_16], %47 {strides = array<i32>} : memref<1x2x128xf32, #tpu.memory_space<vmem>>, vector<1x2x128xf32>,
    return
  }
  func.func @transform_0(%arg0: i32, %arg1: i32) -> (i32, i32, i32) {
    %c0_i32 = arith.constant 0 : i32
    %c0_i32_0 = arith.constant 0 : i32
    return %arg0, %c0_i32, %arg1 : i32, i32, i32
  }
  func.func @transform_1(%arg0: i32, %arg1: i32) -> (i32, i32, i32) {
    %c0_i32 = arith.constant 0 : i32
    %c0_i32_0 = arith.constant 0 : i32
    return %arg0, %c0_i32, %arg1 : i32, i32, i32
  }
  func.func @transform_2(%arg0: i32, %arg1: i32) -> (i32, i32, i32) {
    %c1_i32 = arith.constant 1 : i32
    %0 = arith.muli %arg0, %c1_i32 : i32
    %1 = arith.addi %0, %arg1 : i32
    %c0_i32 = arith.constant 0 : i32
    %c0_i32_0 = arith.constant 0 : i32
    %c0_i32_1 = arith.constant 0 : i32
    return %1, %c0_i32, %c0_i32_0 : i32, i32, i32
  }
}

</mosaic_0001>

<bundles_post_ra>
// kernel: cross_entropy_loss_2d.1
= control target key start
LH: loop header
LB: loop body
LE: loop exit
PB: predicated region body
PF: predicated region fallthrough
CT: control target
= control target key end

     0   :  { %s522_s9 = smov 0   ;;  %s524_s10 = smov 0   ;;  %s579_s0 = inlined_call_operand.vmem [shape: f32[2,4,256], index: 0, kind: input, shape index: {}]   ;;  %s580_s1 = inlined_call_operand.vmem [shape: s32[2,1,256], index: 1, kind: input, shape index: {}]   ;;  %s581_s2 = inlined_call_operand.vmem [shape: f32[2,2,128], index: 2, kind: output, shape index: {}]  }
   0x1   :  { %s526_s11 = smov 0  }
   0x2 LB: > { %s24_s12 = sadd.s32 1, %s499_s10  ;;  %p436_p0 = scmp.ge.s32.totalorder %s503_s11, 1  ;;  %s503_s11 = sphi %s526_s11, %s12_s11   ;;  %s499_s10 = sphi %s524_s10, %s583_s10   ;;  %s495_s9 = sphi %s522_s9, %s582_s9  }
   0x3   : > { %p26_p1 = scmp.ge.s32.totalorder %s24_s12, 2  ;;  %p149_p2 = scmp.lt.s32.totalorder %s503_s11, 3 }
   0x5   : > { %s585_s12 = smov (%p26_p1, %s24_s12), 0  ;;  %p150_p3 = pnand %p436_p0, %p149_p2 }
   0x6   : > { %p184_p4 = scmp.lt.s32.totalorder (!%p150_p3), %s495_s9, 1  ;;  %vm213_vm0 = vcmask (!%p150_p3), 1043456   ;;  %v256_v13 = vlaneseq (!%p150_p3)  ;;  %v505_v56 = vmov (!%p150_p3), 0   ;;  %vm314_vm5 = vcmask (!%p150_p3), 1040384  }
   0x7   : > { %153 = sbr.rel (%p150_p3) target bundleno = 295 (0x127), region = 28 }
   0x8   : > { %v549_v17 = vshrl.u32 (!%p150_p3), %v256_v13, 7 }
   0xa   : > { %v260_v20 = vsub.s32 (!%p150_p3), 0, %v549_v17  ;;  %v264_v23 = vsub.s32 (!%p150_p3), 1, %v549_v17  ;;  %vm341_vm7 = vcmp.eq.s32.totalorder (!%p150_p3), %v549_v17, 0 }
   0xe   : > { %s587_s9 = smov (!%p184_p4, %s495_s9), 1 }
   0xf   : > { %s443_s13 = sshll.u32 %s587_s9, 3  ;;  %s439_s17 = sshll.u32 %s587_s9, 1 }
  0x10   : > { %s191_s16 = scalar_lea.vmem %s579_s0, %s443_s13  ;;  %s200_s20 = scalar_lea.vmem %s580_s1, %s439_s17 }
  0x11   : > { %v208_v0 = vld [vmem:[%s191_s16] sm:$0xff]  ;;  %s206_s24 = scalar_lea.vmem %s581_s2, %s439_s17 }
  0x12   : > { %v211_v1 = vcombine.high %v208_v0, %v208_v0  ;;  %v214_v2 = vsel %vm213_vm0, %v208_v0, -inf  ;;  %v209_v21 = vld [vmem:[%s200_s20] sm:$0x3] }
  0x13   : > { %v215_v3 = vrot.slane %v214_v2, 4  ;;  %v261_v24 = vrot.slane %v209_v21, %v260_v20  ;;  %v265_v25 = vrot.slane %v209_v21, %v264_v23  ;;  %vm296_vm3 = vcmp.ne.s32.totalorder %v209_v21, 4294967196 }
  0x14   : > { %v221_v4 = vsel %vm213_vm0, %v211_v1, -inf  ;;  %v297_v57 = vsel %vm296_vm3, 1, %v505_v56 }
  0x15   : > { %v216_v5 = vmax.f32 %v214_v2, %v215_v3  ;;  %v222_v6 = vrot.slane %v221_v4, 4  ;;  %vm266_vm1 = vcmp.eq.s32.totalorder %v549_v17, %v261_v24  ;;  %vm267_vm2 = vcmp.eq.s32.totalorder %v549_v17, %v265_v25 }
  0x16   : > { %v301_v59 = vrot.slane %v297_v57, %v260_v20  ;;  %v305_v62 = vrot.slane %v297_v57, %v264_v23 }
  0x17   : > { %v217_v7 = vrot.slane %v216_v5, 2  ;;  %v223_v8 = vmax.f32 %v221_v4, %v222_v6  ;;  %v506_v6 = vmov 0.0  }
  0x18   : > { %vm306_vm4 = vcmp.ne.s32.totalorder %v301_v59, 0  ;;  %vm307_vm6 = vcmp.ne.s32.totalorder %v305_v62, 0 }
  0x19   : > { %v218_v9 = vmax.f32 %v216_v5, %v217_v7  ;;  %v224_v10 = vrot.slane %v223_v8, 2  ;;  %v327_v7 = vsel %vm306_vm4, 1.0, %v506_v6 }
  0x1b   : > { %v219_v11 = vrot.slane %v218_v9, 1  ;;  %v225_v12 = vmax.f32 %v223_v8, %v224_v10  ;;  %v328_v8 = vsel %vm307_vm6, 1.0, %v506_v6 }
  0x1c   : > { %v330_v13 = vsel %vm314_vm5, %v328_v8, 0.0 }
  0x1d   : > { %v220_v14 = vmax.f32 %v218_v9, %v219_v11  ;;  %v226_v15 = vrot.slane %v225_v12, 1 }
  0x1f   : > { %v227_v16 = vmax.f32 %v225_v12, %v226_v15  ;;  %v329_v12 = vsel %vm314_vm5, %v327_v7, 0.0 }
  0x20   : > { %v331_v15 = vadd.f32 %v330_v13, %v329_v12 }
  0x21   : > { %v230_v18 = vcombine.low %v220_v14, %v227_v16 }
  0x23   : > { %v232_v19 = vsub.f32 %v208_v0, %v230_v18 }
  0x25   : > { %v233_v22 = vmul.f32 1.442695, %v232_v19  ;;  %v269_v26 = vcombine.high %v232_v19, %v232_v19  ;;  %v271_v27 = vsel %vm266_vm1, %v232_v19, 0.0 }
  0x26   : > { %v273_v30 = vsel %vm213_vm0, %v271_v27, 0.0 }
  0x27   : > { %475 = vpow2.f32 %v233_v22  ;;  %v272_v28 = vsel %vm267_vm2, %v269_v26, 0.0  ;;  %v274_v36 = vrot.slane %v273_v30, 4 }
  0x28   : > { %v280_v34 = vsel %vm213_vm0, %v272_v28, 0.0 }
  0x29   : > { %v281_v39 = vrot.slane %v280_v34, 4  ;;  %v275_v42 = vadd.f32 %v274_v36, %v273_v30 }
  0x2b   : > { %v282_v45 = vadd.f32 %v281_v39, %v280_v34  ;;  %v276_v48 = vrot.slane %v275_v42, 2 }
  0x2d   : > { %v283_v51 = vrot.slane %v282_v45, 2  ;;  %v277_v53 = vadd.f32 %v276_v48, %v275_v42 }
  0x2f   : > { %v284_v54 = vadd.f32 %v283_v51, %v282_v45  ;;  %v278_v55 = vrot.slane %v277_v53, 1 }
  0x31   : > { %v476_v29 = vpop.eup %475  ;;  %v285_v58 = vrot.slane %v284_v54, 1  ;;  %v279_v60 = vadd.f32 %v278_v55, %v277_v53 }
  0x32   : > { %v236_v31 = vcombine.high %v476_v29, %v476_v29  ;;  %v238_v32 = vsel %vm213_vm0, %v476_v29, 0.0 }
  0x33   : > { %v239_v33 = vrot.slane %v238_v32, 4  ;;  %v286_v0 = vadd.f32 %v285_v58, %v284_v54 }
  0x34   : > { %v245_v35 = vsel %vm213_vm0, %v236_v31, 0.0 }
  0x35   : > { %v240_v37 = vadd.f32 %v239_v33, %v238_v32  ;;  %v246_v38 = vrot.slane %v245_v35, 4 }
  0x37   : > { %v241_v40 = vrot.slane %v240_v37, 2  ;;  %v247_v41 = vadd.f32 %v246_v38, %v245_v35 }
  0x39   : > { %v242_v43 = vadd.f32 %v241_v40, %v240_v37  ;;  %v248_v44 = vrot.slane %v247_v41, 2 }
  0x3b   : > { %v243_v46 = vrot.slane %v242_v43, 1  ;;  %v249_v47 = vadd.f32 %v248_v44, %v247_v41 }
  0x3d   : > { %v244_v49 = vadd.f32 %v243_v46, %v242_v43  ;;  %v250_v50 = vrot.slane %v249_v47, 1 }
  0x3f   : > { %v251_v52 = vadd.f32 %v250_v50, %v249_v47  ;;  %477 = vlog2.f32 %v244_v49 }
  0x41   : > { %479 = vlog2.f32 %v251_v52 }
  0x49   : > { %v478_v61 = vpop.eup %477 }
  0x4a   : > { %v253_v63 = vmul.f32 0.6931472, %v478_v61 }
  0x4b   : > { %v480_v1 = vpop.eup %479 }
  0x4c   : > { %v255_v2 = vmul.f32 0.6931472, %v480_v1  ;;  %v310_v3 = vsub.f32 %v253_v63, %v279_v60 }
  0x4e   : > { %v311_v4 = vsub.f32 %v255_v2, %v286_v0  ;;  %v312_v5 = vsel %vm306_vm4, %v310_v3, 0.0 }
  0x4f   : > { %v315_v9 = vsel %vm314_vm5, %v312_v5, 0.0 }
  0x50   : > { %v313_v10 = vsel %vm307_vm6, %v311_v4, 0.0 }
  0x51   : > { %v316_v11 = vsel %vm314_vm5, %v313_v10, 0.0 }
  0x52   : > { %v317_v14 = vadd.f32 %v316_v11, %v315_v9 }
  0x54   : > { %318 = vadd.xlane.f32.xlu0 %v317_v14 }
  0x58   : > { %332 = vadd.xlane.f32.xlu0 %v331_v15 }
  0xe1   : > { %v319_v16 = vpop.xlane.xlu0 %318 }
  0xe2   : > { %v320_v18 = vrot.slane %v319_v16, 4 }
  0xe4   : > { %v321_v19 = vadd.f32 %v320_v18, %v319_v16 }
  0xe5   : > { %v333_v20 = vpop.xlane.xlu0 %332 }
  0xe6   : > { %v322_v21 = vrot.slane %v321_v19, 2  ;;  %v334_v22 = vrot.slane %v333_v20, 4 }
  0xe8   : > { %v335_v23 = vadd.f32 %v334_v22, %v333_v20  ;;  %v323_v24 = vadd.f32 %v322_v21, %v321_v19 }
  0xea   : > { %v336_v25 = vrot.slane %v335_v23, 2  ;;  %v324_v26 = vrot.slane %v323_v24, 1 }
  0xec   : > { %v337_v27 = vadd.f32 %v336_v25, %v335_v23  ;;  %v325_v28 = vadd.f32 %v324_v26, %v323_v24 }
  0xee   : > { %444 = vpush %v325_v28  ;;  %v338_v29 = vrot.slane %v337_v27, 1 }
  0xf0   : > { %v339_v30 = vadd.f32 %v338_v29, %v337_v27 }
  0xf2   : > { %446 = vpush %v339_v30 }
 0x11f   : > { %s445_s21 = spop %444 }
 0x120   : > { %v342_v31 = vstv %s445_s21 }
 0x123   : > { %s447_s25 = spop %446 }
 0x124   : > { %v343_v32 = vstv %s447_s25 }
 0x125   : > { %v344_v33 = vsel %vm341_vm7, %v342_v31, %v343_v32 }
 0x126   : > { %345 = vst [vmem:[%s206_s24] sm:$0x3] %v344_v33 }
 0x127 PF: > { %s12_s11 = sadd.s32 1, %s503_s11   ;;  %s582_s9 = smov %s499_s10 }
 0x128   : > { %p9_p5 = scmp.ge.s32.totalorder %s12_s11, 4   ;;  %s583_s10 = smov %s585_s12 }
 0x12a   :  { %11 = sbr.rel (!%p9_p5) target bundleno = 2 (0x2), region = 61 }

</bundles_post_ra>
